<compile_context>
chip_gen: v6e
topology: v6e:2x2x1
jax: 0.10.0
libtpu: 0.0.40
codegen_flags: <defaults>
</compile_context>

<pallas_src>
import functools

import jax
import jax.numpy as jnp
from jax.experimental import pallas as pl
from jax.experimental.pallas import tpu as pltpu

LANE = 128       # lane width (last dim)
SUBLANE = 8      # sublane width (second-to-last dim)
_MIB = 1 << 20
# Conservative scoped-VMEM ceiling that is safe on every generation
# (v7x physical VMEM is 64 MiB; leave headroom for compiler scratch).
_VMEM_CEILING = 48 * _MIB


def _round_up(n, m):
    return ((n + m - 1) // m) * m


# ---------------------------------------------------------------------------
# Fused MLP kernel: all layers in one body, activation kept in registers/VMEM
# ---------------------------------------------------------------------------
def _mlp_kernel(*refs, num_layers: int):
    # refs = (x_ref, w0, b0, w1, b1, ..., w{L-1}, b{L-1}, o_ref)
    x_ref = refs[0]
    o_ref = refs[-1]
    wb = refs[1:-1]

    h = x_ref[...].astype(jnp.float32)
    for i in range(num_layers):
        w = wb[2 * i][...]          # bf16 (K, N_pad)  -> native MXU rate
        b = wb[2 * i + 1][...]      # f32  (1, N_pad)
        # Explicit bf16 cast of the LHS is required: mixed f32/bf16 dot would
        # silently upcast the weight and fall off the bf16 MXU path.
        h = jnp.dot(h.astype(w.dtype), w,
                    preferred_element_type=jnp.float32) + b
        if i < num_layers - 1:
            h = jnp.maximum(h, 0.0)
    o_ref[...] = h.astype(o_ref.dtype)


# ---------------------------------------------------------------------------
# Parameter construction / packing
# ---------------------------------------------------------------------------
def init_mlp_params(key, input_dim, hidden_dim, output_dim, num_layers,
                    dtype=jnp.float32):
    """Deterministic synthetic init matching nn.Linear shapes.
    Layer i: weight [in_i, out_i] (already transposed vs PyTorch), bias [out_i]."""
    h = [hidden_dim] * (num_layers - 1)
    dims_in = [input_dim] + h
    dims_out = h + [output_dim]
    params = []
    for i, (din, dout) in enumerate(zip(dims_in, dims_out)):
        kw, kb = jax.random.split(jax.random.fold_in(key, i))
        bound = 1.0 / jnp.sqrt(jnp.asarray(din, dtype))
        w = jax.random.uniform(kw, (din, dout), dtype, -bound, bound)
        b = jax.random.uniform(kb, (dout,), dtype, -bound, bound)
        params.append((w, b))
    return params


def pack_mlp_params(params, weight_dtype=jnp.bfloat16):
    """Pack weights once for the fused kernel.

    * Weights cast to bf16 (MXU-native operands, f32 accumulation in-kernel).
    * Only the OUTPUT feature dims are zero-padded to multiples of 128 (lane
      dense matmul results and stores).  Layer i>0's input dim is padded to
      match layer i-1's padded output; layer 0's input dim stays unpadded so
      x needs no wrapper-side padding.  Zero padding is exact through the
      dot/bias/ReLU chain (padded rows of W are zero, padded bias is zero).
    * Biases kept f32, pre-reshaped to (1, Dout_pad).
    """
    packed = []
    prev_out_pad = None
    for li, (w, b) in enumerate(params):
        din, dout = w.shape
        din_p = din if li == 0 else prev_out_pad
        dout_p = _round_up(dout, LANE)
        w_p = jnp.zeros((din_p, dout_p), weight_dtype)
        w_p = w_p.at[:din, :dout].set(w.astype(weight_dtype))
        b_p = jnp.zeros((1, dout_p), jnp.float32)
        b_p = b_p.at[0, :dout].set(b.astype(jnp.float32))
        packed.append((w_p, b_p))
        prev_out_pad = dout_p
    return packed


# ---------------------------------------------------------------------------
# Forward pass: one fused pallas_call, M-tiled "parallel" grid
# ---------------------------------------------------------------------------
@functools.partial(jax.jit, static_argnums=(2, 3))
def mlp_forward(packed_params, x, out_dim, single_buffer_weights=True):
    """x: [..., input_dim] -> [..., out_dim].  packed_params from pack_mlp_params."""
    lead = x.shape[:-1]
    din = x.shape[-1]
    x2d = x.reshape(-1, din)
    M = x2d.shape[0]

    num_layers = len(packed_params)
    dout_p = packed_params[-1][0].shape[1]
    x_bytes = jnp.dtype(x.dtype).itemsize
    w_bytes = jnp.dtype(packed_params[0][0].dtype).itemsize

    # Row tile: multiple of 8 sublanes.  Aim for >= 2 grid steps whenever M
    # allows it (v7x has 2 TensorCores; "parallel" only shards with >= 2
    # steps), capped at 512 rows so tiles fit comfortably on every generation.
    TM = min(512, _round_up(max(pl.cdiv(M, 2), 1), SUBLANE))

    # ---- VMEM budget / fit guard -------------------------------------------
    weight_bytes = sum(int(w.size) * w_bytes for w, _ in packed_params)
    bias_bytes = sum(int(b.size) * 4 for _, b in packed_params)
    wb_buf = 1 if single_buffer_weights else 2
    resident_wb = wb_buf * (weight_bytes + bias_bytes)
    max_feat = max(din, max(int(w.shape[1]) for w, _ in packed_params))

    def _act_bytes(tm):
        # double-buffered input/output tiles + in-kernel f32 activation slab
        return (2 * tm * din * x_bytes
                + 2 * tm * dout_p * x_bytes
                + 2 * tm * max_feat * 4)

    while TM > SUBLANE and resident_wb + _act_bytes(TM) > int(0.9 * _VMEM_CEILING):
        TM = _round_up(TM // 2, SUBLANE)
    if resident_wb + _act_bytes(TM) > _VMEM_CEILING:
        # TODO(synk): split the largest layer over an N-grid axis (or fall back
        # to per-layer tiled pallas_calls) when all-resident weights exceed
        # v7x's 64 MiB VMEM.
        raise NotImplementedError(
            "MLP weights too large for the fully fused, all-resident kernel")

    grid_m = pl.cdiv(M, TM)
    vmem_limit = int(min(_VMEM_CEILING,
                         max(32 * _MIB, 2 * (resident_wb + _act_bytes(TM)))))

    # ---- cost estimate (helps XLA schedule around the custom call) ----------
    flops = 2 * M * sum(int(w.shape[0]) * int(w.shape[1])
                        for w, _ in packed_params)
    bytes_accessed = (M * din * x_bytes + weight_bytes + bias_bytes
                      + M * dout_p * x_bytes)
    cost = pl.CostEstimate(flops=int(flops), transcendentals=0,
                           bytes_accessed=int(bytes_accessed))

    # ---- specs ---------------------------------------------------------------
    # x: full (unpadded) feature dim as the block's last dim (allowed by the
    # (8,128) rule), ragged M handled by the cdiv grid + boundary masking, so
    # no materialized zero-pad of the activations is needed.
    in_specs = [pl.BlockSpec((TM, din), lambda i: (i, 0))]
    flat_wb = []
    for w_p, b_p in packed_params:
        if single_buffer_weights:
            # Constant index_map -> never re-DMA'd; one buffer is enough.
            in_specs.append(pl.BlockSpec(w_p.shape, lambda i: (0, 0),
                                         pipeline_mode=pl.Buffered(1)))
            in_specs.append(pl.BlockSpec(b_p.shape, lambda i: (0, 0),
                                         pipeline_mode=pl.Buffered(1)))
        else:
            in_specs.append(pl.BlockSpec(w_p.shape, lambda i: (0, 0)))
            in_specs.append(pl.BlockSpec(b_p.shape, lambda i: (0, 0)))
        flat_wb += [w_p, b_p]

    out_pad = pl.pallas_call(
        functools.partial(_mlp_kernel, num_layers=num_layers),
        out_shape=jax.ShapeDtypeStruct((M, dout_p), x.dtype),
        grid=(grid_m,),
        in_specs=in_specs,
        out_specs=pl.BlockSpec((TM, dout_p), lambda i: (i, 0)),
        compiler_params=pltpu.CompilerParams(
            dimension_semantics=("parallel",),  # independent row tiles
            vmem_limit_bytes=vmem_limit,
        ),
        cost_estimate=cost,
    )(x2d, *flat_wb)

    out = out_pad[:, :out_dim]
    return out.reshape(*lead, out_dim)


# ---------------------------------------------------------------------------
if __name__ == "__main__":
    key = jax.random.PRNGKey(0)

    # Small shapes consistent with the module's usage (e.g. bbox-embed MLP):
    batch, seq = 2, 8
    input_dim, hidden_dim, output_dim, num_layers = 32, 32, 8, 3

    k_x, k_p = jax.random.split(key)
    x = jax.random.normal(k_x, (batch, seq, input_dim), jnp.float32)
    params = init_mlp_params(k_p, input_dim, hidden_dim, output_dim, num_layers)
    packed = pack_mlp_params(params)

    try:
        out = jax.block_until_ready(mlp_forward(packed, x, output_dim, True))
    except Exception:
        # Fallback if single-buffered (pl.Buffered(1)) resident operands are
        # rejected by this toolchain: retry with default double-buffering.
        out = jax.block_until_ready(mlp_forward(packed, x, output_dim, False))

    # Reference check in plain JAX (f32, no Pallas, no padding).
    ref = x.reshape(-1, input_dim)
    for i, (w, b) in enumerate(params):
        ref = ref @ w + b
        if i < num_layers - 1:
            ref = jnp.maximum(ref, 0.0)
    ref = ref.reshape(batch, seq, output_dim)

    assert out.shape == (batch, seq, output_dim), out.shape
    # bf16 MXU operands (f32 accumulation) -> looser tolerance than pure f32.
    err = jnp.max(jnp.abs(out - ref))
    assert jnp.allclose(out, ref, atol=5e-2, rtol=5e-2), f"mismatch, max err {err}"

    print("KERNEL_OK")
</pallas_src>

<mosaic_0001>
module attributes {stable_mosaic.version = 11 : i64} {
  func.func @_mlp_kernel(%arg0: i32, %arg1: memref<8x32xf32, #tpu.memory_space<vmem>>, %arg2: memref<32x128xbf16, #tpu.memory_space<vmem>>, %arg3: memref<1x128xf32, #tpu.memory_space<vmem>>, %arg4: memref<128x128xbf16, #tpu.memory_space<vmem>>, %arg5: memref<1x128xf32, #tpu.memory_space<vmem>>, %arg6: memref<128x128xbf16, #tpu.memory_space<vmem>>, %arg7: memref<1x128xf32, #tpu.memory_space<vmem>>, %arg8: memref<8x128xf32, #tpu.memory_space<vmem>>) attributes {dimension_semantics = [#tpu.dimension_semantics<parallel>], iteration_bounds = array<i64: 2>, scalar_prefetch = 0 : i64, scratch_operands = 0 : i64, tpu.core_type = #tpu.core_type<tc>, window_params = [{transform_indices = @transform_0, window_bounds = array<i64: 8, 32>}, {pipeline_mode = #tpu.pipeline_mode<synchronous>, transform_indices = @transform_1, window_bounds = array<i64: 32, 128>}, {pipeline_mode = #tpu.pipeline_mode<synchronous>, transform_indices = @transform_2, window_bounds = array<i64: 1, 128>}, {pipeline_mode = #tpu.pipeline_mode<synchronous>, transform_indices = @transform_3, window_bounds = array<i64: 128, 128>}, {pipeline_mode = #tpu.pipeline_mode<synchronous>, transform_indices = @transform_4, window_bounds = array<i64: 1, 128>}, {pipeline_mode = #tpu.pipeline_mode<synchronous>, transform_indices = @transform_5, window_bounds = array<i64: 128, 128>}, {pipeline_mode = #tpu.pipeline_mode<synchronous>, transform_indices = @transform_6, window_bounds = array<i64: 1, 128>}, {transform_indices = @transform_7, window_bounds = array<i64: 8, 128>}]} {
    %c0 = arith.constant 0 : index
    %c0_0 = arith.constant 0 : index
    %0 = vector.load %arg1[%c0, %c0_0] : memref<8x32xf32, #tpu.memory_space<vmem>>, vector<8x32xf32>
    %c0_1 = arith.constant 0 : index
    %c0_2 = arith.constant 0 : index
    %1 = vector.load %arg2[%c0_1, %c0_2] : memref<32x128xbf16, #tpu.memory_space<vmem>>, vector<32x128xbf16>
    %c0_3 = arith.constant 0 : index
    %c0_4 = arith.constant 0 : index
    %2 = vector.load %arg3[%c0_3, %c0_4] : memref<1x128xf32, #tpu.memory_space<vmem>>, vector<1x128xf32>
    %3 = arith.truncf %0 : vector<8x32xf32> to vector<8x32xbf16>
    %cst = arith.constant dense<0.000000e+00> : vector<8x128xf32>
    %4 = tpu.matmul %3, %1, %cst {dimension_numbers = #tpu.dot_dimension_numbers<[1], [0], [0], [1], [0, 0, 1, 1], [], []>} : vector<8x32xbf16>, vector<32x128xbf16>, vector<8x128xf32> -> vector<8x128xf32>
    %5 = vector.broadcast %2 : vector<1x128xf32> to vector<8x128xf32>
    %6 = arith.addf %4, %5 : vector<8x128xf32>
    %cst_5 = arith.constant 0.000000e+00 : f32
    %7 = vector.broadcast %cst_5 : f32 to vector<8x128xf32>
    %8 = arith.maximumf %6, %7 : vector<8x128xf32>
    %c0_6 = arith.constant 0 : index
    %c0_7 = arith.constant 0 : index
    %9 = vector.load %arg4[%c0_6, %c0_7] : memref<128x128xbf16, #tpu.memory_space<vmem>>, vector<128x128xbf16>
    %c0_8 = arith.constant 0 : index
    %c0_9 = arith.constant 0 : index
    %10 = vector.load %arg5[%c0_8, %c0_9] : memref<1x128xf32, #tpu.memory_space<vmem>>, vector<1x128xf32>
    %11 = arith.truncf %8 : vector<8x128xf32> to vector<8x128xbf16>
    %cst_10 = arith.constant dense<0.000000e+00> : vector<8x128xf32>
    %12 = tpu.matmul %11, %9, %cst_10 {dimension_numbers = #tpu.dot_dimension_numbers<[1], [0], [0], [1], [0, 0, 1, 1], [], []>} : vector<8x128xbf16>, vector<128x128xbf16>, vector<8x128xf32> -> vector<8x128xf32>
    %13 = vector.broadcast %10 : vector<1x128xf32> to vector<8x128xf32>
    %14 = arith.addf %12, %13 : vector<8x128xf32>
    %cst_11 = arith.constant 0.000000e+00 : f32
    %15 = vector.broadcast %cst_11 : f32 to vector<8x128xf32>
    %16 = arith.maximumf %14, %15 : vector<8x128xf32>
    %c0_12 = arith.constant 0 : index
    %c0_13 = arith.constant 0 : index
    %17 = vector.load %arg6[%c0_12, %c0_13] : memref<128x128xbf16, #tpu.memory_space<vmem>>, vector<128x128xbf16>
    %c0_14 = arith.constant 0 : index
    %c0_15 = arith.constant 0 : index
    %18 = vector.load %arg7[%c0_14, %c0_15] : memref<1x128xf32, #tpu.memory_space<vmem>>, vector<1x128xf32>
    %19 = arith.truncf %16 : vector<8x128xf32> to vector<8x128xbf16>
    %cst_16 = arith.constant dense<0.000000e+00> : vector<8x128xf32>
    %20 = tpu.matmul %19, %17, %cst_16 {dimension_numbers = #tpu.dot_dimension_numbers<[1], [0], [0], [1], [0, 0, 1, 1], [], []>} : vector<8x128xbf16>, vector<128x128xbf16>, vector<8x128xf32> -> vector<8x128xf32>
    %21 = vector.broadcast %18 : vector<1x128xf32> to vector<8x128xf32>
    %22 = arith.addf %20, %21 : vector<8x128xf32>
    %c0_17 = arith.constant 0 : index
    %c0_18 = arith.constant 0 : index
    %23 = vector.load %arg8[%c0_17, %c0_18] : memref<8x128xf32, #tpu.memory_space<vmem>>, vector<8x128xf32>
    tpu.vector_store %arg8[%c0_17, %c0_18], %22 {strides = array<i32>} : memref<8x128xf32, #tpu.memory_space<vmem>>, vector<8x128xf32>,
    return
  }
  func.func @transform_0(%arg0: i32) -> (i32, i32) {
    %c0_i32 = arith.constant 0 : i32
    %c0_i32_0 = arith.constant 0 : i32
    return %arg0, %c0_i32 : i32, i32
  }
  func.func @transform_1(%arg0: i32) -> (i32, i32) {
    %c0_i32 = arith.constant 0 : i32
    %c0_i32_0 = arith.constant 0 : i32
    %c0_i32_1 = arith.constant 0 : i32
    return %c0_i32, %c0_i32_0 : i32, i32
  }
  func.func @transform_2(%arg0: i32) -> (i32, i32) {
    %c0_i32 = arith.constant 0 : i32
    %c0_i32_0 = arith.constant 0 : i32
    %c0_i32_1 = arith.constant 0 : i32
    return %c0_i32, %c0_i32_0 : i32, i32
  }
  func.func @transform_3(%arg0: i32) -> (i32, i32) {
    %c0_i32 = arith.constant 0 : i32
    %c0_i32_0 = arith.constant 0 : i32
    %c0_i32_1 = arith.constant 0 : i32
    return %c0_i32, %c0_i32_0 : i32, i32
  }
  func.func @transform_4(%arg0: i32) -> (i32, i32) {
    %c0_i32 = arith.constant 0 : i32
    %c0_i32_0 = arith.constant 0 : i32
    %c0_i32_1 = arith.constant 0 : i32
    return %c0_i32, %c0_i32_0 : i32, i32
  }
  func.func @transform_5(%arg0: i32) -> (i32, i32) {
    %c0_i32 = arith.constant 0 : i32
    %c0_i32_0 = arith.constant 0 : i32
    %c0_i32_1 = arith.constant 0 : i32
    return %c0_i32, %c0_i32_0 : i32, i32
  }
  func.func @transform_6(%arg0: i32) -> (i32, i32) {
    %c0_i32 = arith.constant 0 : i32
    %c0_i32_0 = arith.constant 0 : i32
    %c0_i32_1 = arith.constant 0 : i32
    return %c0_i32, %c0_i32_0 : i32, i32
  }
  func.func @transform_7(%arg0: i32) -> (i32, i32) {
    %c0_i32 = arith.constant 0 : i32
    %c0_i32_0 = arith.constant 0 : i32
    return %arg0, %c0_i32 : i32, i32
  }
}

module attributes {stable_mosaic.version = 11 : i64} {
  func.func @_mlp_kernel(%arg0: i32, %arg1: memref<8x32xf32, #tpu.memory_space<vmem>>, %arg2: memref<32x128xbf16, #tpu.memory_space<vmem>>, %arg3: memref<1x128xf32, #tpu.memory_space<vmem>>, %arg4: memref<128x128xbf16, #tpu.memory_space<vmem>>, %arg5: memref<1x128xf32, #tpu.memory_space<vmem>>, %arg6: memref<128x128xbf16, #tpu.memory_space<vmem>>, %arg7: memref<1x128xf32, #tpu.memory_space<vmem>>, %arg8: memref<8x128xf32, #tpu.memory_space<vmem>>) attributes {dimension_semantics = [#tpu.dimension_semantics<parallel>], iteration_bounds = array<i64: 2>, scalar_prefetch = 0 : i64, scratch_operands = 0 : i64, tpu.core_type = #tpu.core_type<tc>, window_params = [{transform_indices = @transform_0, window_bounds = array<i64: 8, 32>}, {pipeline_mode = #tpu.pipeline_mode<synchronous>, transform_indices = @transform_1, window_bounds = array<i64: 32, 128>}, {pipeline_mode = #tpu.pipeline_mode<synchronous>, transform_indices = @transform_2, window_bounds = array<i64: 1, 128>}, {pipeline_mode = #tpu.pipeline_mode<synchronous>, transform_indices = @transform_3, window_bounds = array<i64: 128, 128>}, {pipeline_mode = #tpu.pipeline_mode<synchronous>, transform_indices = @transform_4, window_bounds = array<i64: 1, 128>}, {pipeline_mode = #tpu.pipeline_mode<synchronous>, transform_indices = @transform_5, window_bounds = array<i64: 128, 128>}, {pipeline_mode = #tpu.pipeline_mode<synchronous>, transform_indices = @transform_6, window_bounds = array<i64: 1, 128>}, {transform_indices = @transform_7, window_bounds = array<i64: 8, 128>}]} {
    %c0 = arith.constant 0 : index
    %c0_0 = arith.constant 0 : index
    %0 = vector.load %arg1[%c0, %c0_0] : memref<8x32xf32, #tpu.memory_space<vmem>>, vector<8x32xf32>
    %c0_1 = arith.constant 0 : index
    %c0_2 = arith.constant 0 : index
    %1 = vector.load %arg2[%c0_1, %c0_2] : memref<32x128xbf16, #tpu.memory_space<vmem>>, vector<32x128xbf16>
    %c0_3 = arith.constant 0 : index
    %c0_4 = arith.constant 0 : index
    %2 = vector.load %arg3[%c0_3, %c0_4] : memref<1x128xf32, #tpu.memory_space<vmem>>, vector<1x128xf32>
    %3 = arith.truncf %0 : vector<8x32xf32> to vector<8x32xbf16>
    %cst = arith.constant dense<0.000000e+00> : vector<8x128xf32>
    %4 = tpu.matmul %3, %1, %cst {dimension_numbers = #tpu.dot_dimension_numbers<[1], [0], [0], [1], [0, 0, 1, 1], [], []>} : vector<8x32xbf16>, vector<32x128xbf16>, vector<8x128xf32> -> vector<8x128xf32>
    %5 = vector.broadcast %2 : vector<1x128xf32> to vector<8x128xf32>
    %6 = arith.addf %4, %5 : vector<8x128xf32>
    %cst_5 = arith.constant 0.000000e+00 : f32
    %7 = vector.broadcast %cst_5 : f32 to vector<8x128xf32>
    %8 = arith.maximumf %6, %7 : vector<8x128xf32>
    %c0_6 = arith.constant 0 : index
    %c0_7 = arith.constant 0 : index
    %9 = vector.load %arg4[%c0_6, %c0_7] : memref<128x128xbf16, #tpu.memory_space<vmem>>, vector<128x128xbf16>
    %c0_8 = arith.constant 0 : index
    %c0_9 = arith.constant 0 : index
    %10 = vector.load %arg5[%c0_8, %c0_9] : memref<1x128xf32, #tpu.memory_space<vmem>>, vector<1x128xf32>
    %11 = arith.truncf %8 : vector<8x128xf32> to vector<8x128xbf16>
    %cst_10 = arith.constant dense<0.000000e+00> : vector<8x128xf32>
    %12 = tpu.matmul %11, %9, %cst_10 {dimension_numbers = #tpu.dot_dimension_numbers<[1], [0], [0], [1], [0, 0, 1, 1], [], []>} : vector<8x128xbf16>, vector<128x128xbf16>, vector<8x128xf32> -> vector<8x128xf32>
    %13 = vector.broadcast %10 : vector<1x128xf32> to vector<8x128xf32>
    %14 = arith.addf %12, %13 : vector<8x128xf32>
    %cst_11 = arith.constant 0.000000e+00 : f32
    %15 = vector.broadcast %cst_11 : f32 to vector<8x128xf32>
    %16 = arith.maximumf %14, %15 : vector<8x128xf32>
    %c0_12 = arith.constant 0 : index
    %c0_13 = arith.constant 0 : index
    %17 = vector.load %arg6[%c0_12, %c0_13] : memref<128x128xbf16, #tpu.memory_space<vmem>>, vector<128x128xbf16>
    %c0_14 = arith.constant 0 : index
    %c0_15 = arith.constant 0 : index
    %18 = vector.load %arg7[%c0_14, %c0_15] : memref<1x128xf32, #tpu.memory_space<vmem>>, vector<1x128xf32>
    %19 = arith.truncf %16 : vector<8x128xf32> to vector<8x128xbf16>
    %cst_16 = arith.constant dense<0.000000e+00> : vector<8x128xf32>
    %20 = tpu.matmul %19, %17, %cst_16 {dimension_numbers = #tpu.dot_dimension_numbers<[1], [0], [0], [1], [0, 0, 1, 1], [], []>} : vector<8x128xbf16>, vector<128x128xbf16>, vector<8x128xf32> -> vector<8x128xf32>
    %21 = vector.broadcast %18 : vector<1x128xf32> to vector<8x128xf32>
    %22 = arith.addf %20, %21 : vector<8x128xf32>
    %c0_17 = arith.constant 0 : index
    %c0_18 = arith.constant 0 : index
    %23 = vector.load %arg8[%c0_17, %c0_18] : memref<8x128xf32, #tpu.memory_space<vmem>>, vector<8x128xf32>
    tpu.vector_store %arg8[%c0_17, %c0_18], %22 {strides = array<i32>} : memref<8x128xf32, #tpu.memory_space<vmem>>, vector<8x128xf32>,
    return
  }
  func.func @transform_0(%arg0: i32) -> (i32, i32) {
    %c0_i32 = arith.constant 0 : i32
    %c0_i32_0 = arith.constant 0 : i32
    return %arg0, %c0_i32 : i32, i32
  }
  func.func @transform_1(%arg0: i32) -> (i32, i32) {
    %c0_i32 = arith.constant 0 : i32
    %c0_i32_0 = arith.constant 0 : i32
    %c0_i32_1 = arith.constant 0 : i32
    return %c0_i32, %c0_i32_0 : i32, i32
  }
  func.func @transform_2(%arg0: i32) -> (i32, i32) {
    %c0_i32 = arith.constant 0 : i32
    %c0_i32_0 = arith.constant 0 : i32
    %c0_i32_1 = arith.constant 0 : i32
    return %c0_i32, %c0_i32_0 : i32, i32
  }
  func.func @transform_3(%arg0: i32) -> (i32, i32) {
    %c0_i32 = arith.constant 0 : i32
    %c0_i32_0 = arith.constant 0 : i32
    %c0_i32_1 = arith.constant 0 : i32
    return %c0_i32, %c0_i32_0 : i32, i32
  }
  func.func @transform_4(%arg0: i32) -> (i32, i32) {
    %c0_i32 = arith.constant 0 : i32
    %c0_i32_0 = arith.constant 0 : i32
    %c0_i32_1 = arith.constant 0 : i32
    return %c0_i32, %c0_i32_0 : i32, i32
  }
  func.func @transform_5(%arg0: i32) -> (i32, i32) {
    %c0_i32 = arith.constant 0 : i32
    %c0_i32_0 = arith.constant 0 : i32
    %c0_i32_1 = arith.constant 0 : i32
    return %c0_i32, %c0_i32_0 : i32, i32
  }
  func.func @transform_6(%arg0: i32) -> (i32, i32) {
    %c0_i32 = arith.constant 0 : i32
    %c0_i32_0 = arith.constant 0 : i32
    %c0_i32_1 = arith.constant 0 : i32
    return %c0_i32, %c0_i32_0 : i32, i32
  }
  func.func @transform_7(%arg0: i32) -> (i32, i32) {
    %c0_i32 = arith.constant 0 : i32
    %c0_i32_0 = arith.constant 0 : i32
    return %arg0, %c0_i32 : i32, i32
  }
}

</mosaic_0001>

<bundles_post_ra>
// kernel: mlp_forward.1
= control target key start
LH: loop header
LB: loop body
LE: loop exit
PB: predicated region body
PF: predicated region fallthrough
CT: control target
= control target key end

     0   :  { %12 = vsyncpa [#allocation3], 0  ;;  %s1299_s0 = inlined_call_operand.hbm [shape: f32[16,32], index: 0, kind: input, shape index: {}]   ;;  %s1300_s1 = inlined_call_operand.hbm [shape: bf16[32,128], index: 1, kind: input, shape index: {}]   ;;  %s1301_s2 = inlined_call_operand.vmem [shape: f32[1,128], index: 2, kind: input, shape index: {}]   ;;  %s1302_s3 = inlined_call_operand.hbm [shape: bf16[128,128], index: 3, kind: input, shape index: {}]   ;;  %s1303_s4 = inlined_call_operand.vmem [shape: f32[1,128], index: 4, kind: input, shape index: {}]   ;;  %s1304_s5 = inlined_call_operand.hbm [shape: bf16[128,128], index: 5, kind: input, shape index: {}]   ;;  %s1305_s6 = inlined_call_operand.vmem [shape: f32[1,128], index: 6, kind: input, shape index: {}]   ;;  %s1306_s7 = inlined_call_operand.vmem [shape: f32[16,128], index: 7, kind: output, shape index: {}]  }
   0x1   :  { %14 = vsyncpa [#allocation3 + $0x1], 0 }
   0x2   :  { %15 = vsyncpa [#allocation5], 0 }
   0x3   :  { %16 = vsyncpa [#allocation8], 0  ;;  %s1126_s24 = smov 0   ;;  %s1128_s25 = smov 0  }
   0x4   :  { %s1130_s26 = smov 0   ;;  %s1132_s27 = smov 0  }
   0x5 LB: > { %s1145_s28 = sadd.s32 4294967295, %s1076_s27   ;;  %p42_p0 = scmp.ne.s32.totalorder %s1068_s25, %s1064_s24  ;;  %s1076_s27 = sphi %s1132_s27, %s1323_s27   ;;  %s1072_s26 = sphi %s1130_s26, %s1322_s26   ;;  %s1068_s25 = sphi %s1128_s25, %s1321_s25   ;;  %s1064_s24 = sphi %s1126_s24, %s1320_s24  }
   0x6   : > { %p1307_p1 = scmp.eq.s32.totalorder %s1145_s28, 0  ;;  %p730_p2 = scmp.ge.s32.totalorder %s1076_s27, 1 }
   0x7   : > { %p205_p3 = scmp.lt.s32.totalorder %s1076_s27, 3  ;;  %s1078_s8 = smov [#allocation4]  }
   0x8   : > { %p1153_p4 = por %p1307_p1, %p42_p0  ;;  %s217_s9 = sshll.u32 %s1078_s8, 4  ;;  %s218_s9 = int_to_ptr.vmem [resolvable:$true] %s217_s9 }
   0x9   : > { %p1157_p5 = pnand %p730_p2, %p205_p3  ;;  %s1079_s11 = smov [#allocation6]  }
   0xa   : > { %s1310_s29 = scalar_select %p1153_p4, 1, 0 }
   0xb   : > { %s1311_s30 = scalar_select %p1157_p5, 1, 0 }
   0xc   : > { %p850_p6 = pneg %p1157_p5  ;;  %s233_s12 = sshll.u32 %s1079_s11, 4  ;;  %s234_s12 = int_to_ptr.vmem [resolvable:$true] %s233_s12 }
   0xd   : > { %s1080_s13 = smov [#allocation7]   ;;  %s939_s15 = scalar_lea.vmem %s218_s9, 256 }
   0xe   : > { %p1165_p7 = pnand %p850_p6, %p1307_p1  ;;  %s249_s14 = sshll.u32 %s1080_s13, 4  ;;  %s250_s14 = int_to_ptr.vmem [resolvable:$true] %s249_s14 }
   0xf   : > { %p940_p9 = scmp.ne.s32.totalorder %s218_s9, %s939_s15  ;;  %p947_p12 = scmp.lt.s32.totalorder %s218_s9, %s218_s9 }
  0x10   : > { %p930_p8 = pneg %p1165_p7  ;;  %p948_p13 = scmp.lt.s32.totalorder %s939_s15, %s939_s15 }
  0x12   : > { %p942_p10 = pnand %p940_p9, %p930_p8  ;;  %p949_p0 = por %p948_p13, %p947_p12 }
  0x14   : > { %p943_p11 = pneg %p942_p10 }
  0x16   : > { %p950_p2 = pnand %p949_p0, %p943_p11 }
  0x18   : > { %953 = shalt.err (!%p950_p2)
}
  0x19   : > { %s1081_s16 = smov 64   ;;  %s1082_s17 = smov 4  }
  0x1a   : > { %853 = dma.hbm_to_vmem [thread:$0]  (!%p1165_p7), %s1300_s1, 256, %s218_s9, [#allocation5], %s1081_s16, %s1081_s16, %s1082_s17  }
  0x1b   : > { %s965_s20 = scalar_lea.vmem %s234_s12, 1024  ;;  %p973_p10 = scmp.lt.s32.totalorder %s234_s12, %s234_s12 }
  0x1c   : > { %p966_p3 = scmp.ne.s32.totalorder %s234_s12, %s965_s20  ;;  %p974_p1 = scmp.lt.s32.totalorder %s965_s20, %s965_s20 }
  0x1e   : > { %p968_p6 = pnand %p966_p3, %p930_p8  ;;  %p975_p12 = por %p974_p1, %p973_p10 }
  0x20   : > { %p969_p9 = pneg %p968_p6 }
  0x22   : > { %p976_p11 = pnand %p975_p12, %p969_p9 }
  0x24   : > { %979 = shalt.err (!%p976_p11)
}
  0x25   : > { %856 = dma.hbm_to_vmem [thread:$0]  (!%p1165_p7), %s1302_s3, 1024, %s234_s12, [#allocation5], %s1081_s16, %s1081_s16, %s1082_s17  }
  0x26   : > { %s991_s23 = scalar_lea.vmem %s250_s14, 1024  ;;  %p999_p3 = scmp.lt.s32.totalorder %s250_s14, %s250_s14 }
  0x27   : > { %p992_p13 = scmp.ne.s32.totalorder %s250_s14, %s991_s23  ;;  %p1000_p6 = scmp.lt.s32.totalorder %s991_s23, %s991_s23 }
  0x29   : > { %p994_p0 = pnand %p992_p13, %p930_p8  ;;  %p1001_p4 = por %p1000_p6, %p999_p3 }
  0x2b   : > { %p995_p2 = pneg %p994_p0 }
  0x2d   : > { %p1002_p1 = pnand %p1001_p4, %p995_p2 }
  0x2f   : > { %1005 = shalt.err (!%p1002_p1)
}
  0x30   : > { %859 = dma.hbm_to_vmem [thread:$0]  (!%p1165_p7), %s1304_s5, 1024, %s250_s14, [#allocation8], %s1081_s16, %s1081_s16, %s1082_s17  }
  0x31   : > { %s1196_s9 = sadd.s32 1, %s1076_s27   ;;  %s29_s12 = sadd.s32 1, %s1072_s26 }
  0x32   : > { %s26_s11 = ssub.s32 %s1076_s27, %s1196_s9  ;;  %p36_p8 = scmp.ne.s32.totalorder %s1072_s26, %s1068_s25 }
  0x33   : > { %p27_p4 = scmp.eq.s32.totalorder %s26_s11, 0  ;;  %p37_p9 = scmp.eq.s32.totalorder %s1076_s27, 0 }
  0x34   : > { %p867_p10 = scmp.lt.s32.totalorder %s1076_s27, 2  ;;  %s266_s13 = sand.u32 1, %s1072_s26  }
  0x35   : > { %s1206_s10 = scalar_select %p27_p4, %s1072_s26, %s29_s12  }
  0x36   : > { %p38_p12 = por %p37_p9, %p36_p8  ;;  %s735_s15 = sshll.u32 %s266_s13, 3 }
  0x37   : > { %s736_s18 = sshll.u32 %s1076_s27, 7  ;;  %s270_s14 = scalar_lea.vmem [#allocation2], %s735_s15 }
  0x38   : > { %s1213_s21 = scalar_lea.hbm %s1299_s0, %s736_s18  ;;  %s277_s16 = sshll.u32 %s270_s14, 4  ;;  %s278_s16 = int_to_ptr.vmem [resolvable:$true] %s277_s16 }
  0x39   : > { %p1215_p7 = pnand %p867_p10, %p38_p12  ;;  %s267_s22 = scalar_lea.sflag [#allocation3], %s266_s13 }
  0x3a   : > { %s1006_s23 = scalar_lea.hbm %s1213_s21, 128  ;;  %s1011_s8 = scalar_lea.hbm %s1299_s0, 256 }
  0x3b   : > { %p1007_p11 = scmp.ne.s32.totalorder %s1213_s21, %s1006_s23  ;;  %p1008_p13 = pneg %p1215_p7 }
  0x3c   : > { %p1012_p3 = scmp.lt.s32.totalorder %s1213_s21, %s1299_s0  ;;  %p1013_p6 = scmp.lt.s32.totalorder %s1011_s8, %s1006_s23 }
  0x3d   : > { %p1009_p0 = pnand %p1008_p13, %p1007_p11 }
  0x3e   : > { %p1014_p1 = por %p1013_p6, %p1012_p3 }
  0x3f   : > { %p1010_p2 = pneg %p1009_p0 }
  0x41   : > { %p1015_p4 = pnand %p1014_p1, %p1010_p2 }
  0x43   : > { %1018 = shalt.err (!%p1015_p4)
}
  0x44   : > { %s1019_s15 = scalar_lea.vmem %s278_s16, 128  ;;  %s1083_s13 = smov [#allocation2]  }
  0x45   : > { %p1020_p8 = scmp.ne.s32.totalorder %s278_s16, %s1019_s15  ;;  %s1024_s18 = sshll.u32 %s1083_s13, 4  ;;  %s1025_s18 = int_to_ptr.vmem [resolvable:$false] %s1024_s18 }
  0x46   : > { %s1026_s19 = scalar_lea.vmem %s1025_s18, 256  ;;  %p1027_p12 = scmp.lt.s32.totalorder %s278_s16, %s1025_s18 }
  0x47   : > { %p1022_p9 = pnand %p1020_p8, %p1008_p13  ;;  %p1028_p11 = scmp.lt.s32.totalorder %s1026_s19, %s1019_s15 }
  0x49   : > { %p1023_p10 = pneg %p1022_p9  ;;  %p1029_p0 = por %p1028_p11, %p1027_p12 }
  0x4b   : > { %p1030_p5 = pnand %p1029_p0, %p1023_p10 }
  0x4d   : > { %1033 = shalt.err (!%p1030_p5)
}
  0x4e   : > { %863 = dma.hbm_to_vmem [thread:$0]  (!%p1215_p7), %s1213_s21, 128, %s278_s16, %s267_s22  }
  0x4f   : > { %p1314_p2 = scmp.ne.s32.totalorder %s1311_s30, 0 }
  0x50   : > { %s288_s20 = sand.u32 (!%p1314_p2), 1, %s1068_s25   ;;  %p1315_p13 = scmp.ne.s32.totalorder (!%p1314_p2), %s1310_s29, 0 }
  0x51   : > { %286 = sbr.rel (%p1314_p2) target bundleno = 701 (0x2bd), region = 48  ;;  %s738_s14 = sshll.u32 (!%p1314_p2), %s288_s20, 3 }
  0x52   : > { %s289_s23 = scalar_lea.sflag (!%p1314_p2), [#allocation3], %s288_s20  ;;  %s292_s27 = scalar_lea.vmem (!%p1314_p2), [#allocation2], %s738_s14 }
  0x56   : > { %1051 = dma.done.wait (%p1315_p13), %s289_s23, 128  }
  0x57   : > { %1053 = vsyncadd (%p1315_p13), %s289_s23, 4294967168  ;;  %p1316_p5 = scmp.eq.s32.totalorder %s1145_s28, 0 }
  0x59   : > { %1055 = dma.done.wait (%p1316_p5), [#allocation5], 1280   ;;  %p1317_p3 = pmov %p1316_p5 }
  0x5b   : > { %1057 = vsyncadd (%p1317_p3), [#allocation5], 4294966016  ;;  %p1318_p7 = pmov %p1317_p3 }
  0x5c   : > { %p1319_p6 = pmov %p1317_p3 }
  0x5d   : > { %1059 = dma.done.wait (%p1318_p7), [#allocation8], 1024  }
  0x5e   : > { %1061 = vsyncadd (%p1319_p6), [#allocation8], 4294966272  ;;  %v1084_v0 = vmov 0.0   ;;  %vm1085_vm0 = vmmov 0   ;;  %v910_v1 = vld [vmem:[#allocation4 + $0x8] sm:$0xff]   ;;  %v911_v2 = vld [vmem:[#allocation4] sm:$0xff]  }
  0x5f   : > { %788 = vmatprep.subr.bf16.mxu0 %v1084_v0  ;;  %792 = vmatprep.mubr.msk.bf16.mxu0 %vm1085_vm0, %v1084_v0  ;;  %v339_v3 = vld [vmem:[%s292_s27] sm:$0xff]  ;;  %v912_v4 = vld [vmem:[#allocation6 + $0x38] sm:$0xff]   ;;  %v913_v6 = vld [vmem:[#allocation6 + $0x30] sm:$0xff]   ;;  %vm364_vm1 = vcmask 261120   ;;  %p334_p1 = scmp.lt.s32.totalorder %s1145_s28, 1 }
  0x60   : > { %796 = vmatprep.subr.bf16.mxu1 %v1084_v0  ;;  %812 = vmatprep.mubr.msk.bf16.mxu1 %vm1085_vm0, %v1084_v0  ;;  %v345_v5 = vpack.c.bf16 %v339_v3, %v339_v3  ;;  %v914_v7 = vld [vmem:[#allocation6 + $0x28] sm:$0xff]   ;;  %v915_v8 = vld [vmem:[#allocation6 + $0x20] sm:$0xff]   ;;  %v916_v9 = vld [vmem:[#allocation6 + $0x18] sm:$0xff]  }
  0x61   : > { %789 = vmatpush3.bf16.msra.mxu0 %v910_v1  ;;  %797 = vmatpush3.bf16.msra.mxu1 %v912_v4  ;;  %v917_v10 = vld [vmem:[#allocation6 + $0x10] sm:$0xff]   ;;  %v918_v11 = vld [vmem:[#allocation6 + $0x8] sm:$0xff]   ;;  %v919_v12 = vld [vmem:[#allocation6] sm:$0xff]   ;;  %s1325_s28 = smov (!%p334_p1, %s1145_s28), 1 }
  0x62   : > { %790 = vmatprep.subr.bf16.mxu0 %v1084_v0  ;;  %798 = vmatprep.subr.bf16.mxu1 %v1084_v0  ;;  %v920_v13 = vld [vmem:[#allocation7 + $0x38] sm:$0xff]   ;;  %v921_v14 = vld [vmem:[#allocation7 + $0x30] sm:$0xff]   ;;  %v922_v15 = vld [vmem:[#allocation7 + $0x28] sm:$0xff]   ;;  %s742_s17 = sshll.u32 %s1325_s28, 3 }
  0x63   : > { %v923_v16 = vld [vmem:[#allocation7 + $0x20] sm:$0xff]   ;;  %v924_v17 = vld [vmem:[#allocation7 + $0x18] sm:$0xff]   ;;  %v925_v18 = vld [vmem:[#allocation7 + $0x10] sm:$0xff]   ;;  %s337_s12 = scalar_lea.vmem %s1306_s7, %s742_s17 }
  0x64   : > { %v743_v19 = vld [vmem:[%s1301_s2] ss:$0 sm:$0xff]  ;;  %v926_v27 = vld [vmem:[#allocation7 + $0x8] sm:$0xff]  }
  0x65   : > { %791 = vmatpush3.bf16.msra.mxu0 %v911_v2  ;;  %799 = vmatpush3.bf16.msra.mxu1 %v913_v6  ;;  %v927_v28 = vld [vmem:[#allocation7] sm:$0xff]  }
  0x66   : > { %816 = vmatprep.subr.bf16.mxu0 %v1084_v0  ;;  %800 = vmatprep.subr.bf16.mxu1 %v1084_v0  ;;  %v747_v29 = vld [vmem:[%s1303_s4] ss:$0 sm:$0xff] }
  0x67   : > { %v756_v37 = vld [vmem:[%s1305_s6] ss:$0 sm:$0xff] }
  0x68   : > { %793 = vmatmul.mubr.msk.bf16.vlgmr.msra.gmra.mxu0 %vm364_vm1, %v345_v5 }
  0x69   : > { %832 = vmatprep.mubr.msk.bf16.mxu0 %vm1085_vm0, %v1084_v0  ;;  %801 = vmatpush3.bf16.msra.mxu1 %v914_v7 }
  0x6a   : > { %802 = vmatprep.subr.bf16.mxu1 %v1084_v0  ;;  %817 = vmatpush3.bf16.msra.mxu0 %v920_v13 }
  0x6b   : > { %818 = vmatprep.subr.bf16.mxu0 %v1084_v0 }
  0x6d   : > { %803 = vmatpush3.bf16.msra.mxu1 %v915_v8 }
  0x6e   : > { %804 = vmatprep.subr.bf16.mxu1 %v1084_v0  ;;  %819 = vmatpush3.bf16.msra.mxu0 %v921_v14 }
  0x6f   : > { %820 = vmatprep.subr.bf16.mxu0 %v1084_v0 }
  0x71   : > { %805 = vmatpush3.bf16.msra.mxu1 %v916_v9 }
  0x72   : > { %806 = vmatprep.subr.bf16.mxu1 %v1084_v0  ;;  %821 = vmatpush3.bf16.msra.mxu0 %v922_v15 }
  0x73   : > { %822 = vmatprep.subr.bf16.mxu0 %v1084_v0 }
  0x75   : > { %807 = vmatpush3.bf16.msra.mxu1 %v917_v10 }
  0x76   : > { %808 = vmatprep.subr.bf16.mxu1 %v1084_v0  ;;  %823 = vmatpush3.bf16.msra.mxu0 %v923_v16 }
  0x77   : > { %824 = vmatprep.subr.bf16.mxu0 %v1084_v0 }
  0x79   : > { %809 = vmatpush3.bf16.msra.mxu1 %v918_v11 }
  0x7a   : > { %810 = vmatprep.subr.bf16.mxu1 %v1084_v0  ;;  %825 = vmatpush3.bf16.msra.mxu0 %v924_v17 }
  0x7b   : > { %826 = vmatprep.subr.bf16.mxu0 %v1084_v0 }
  0x7d   : > { %811 = vmatpush3.bf16.msra.mxu1 %v919_v12 }
  0x7e   : > { %827 = vmatpush3.bf16.msra.mxu0 %v925_v18 }
  0x7f   : > { %828 = vmatprep.subr.bf16.mxu0 %v1084_v0 }
  0x82   : > { %829 = vmatpush3.bf16.msra.mxu0 %v926_v27 }
  0x83   : > { %830 = vmatprep.subr.bf16.mxu0 %v1084_v0 }
  0x86   : > { %831 = vmatpush3.bf16.msra.mxu0 %v927_v28 }
 0x128   : > { %v402_v20 = vpop.f32.mrf.mxu0 }
 0x129   : > { %v403_v21 = vadd.f32 %v743_v19, %v402_v20 }
 0x12a   : > { %v794_v22 = vpop.f32.mrf.mxu0 }
 0x12b   : > { %v408_v23 = vmax.f32 %v403_v21, 0.0 }
 0x12c   : > { %v405_v24 = vpop.f32.mrf.mxu0 }
 0x12d   : > { %v426_v25 = vpack.c.bf16 %v408_v23, %v408_v23 }
 0x12e   : > { %v795_v26 = vpop.f32.mrf.mxu0 }
 0x12f   : > { %813 = vmatmul.mubr.bf16.vlgmr.msra.gmra.mxu1 %v426_v25 }
 0x1ef   : > { %v515_v30 = vpop.f32.mrf.mxu1 }
 0x1f0   : > { %v516_v31 = vadd.f32 %v747_v29, %v515_v30 }
 0x1f1   : > { %v814_v32 = vpop.f32.mrf.mxu1 }
 0x1f2   : > { %v521_v33 = vmax.f32 %v516_v31, 0.0 }
 0x1f3   : > { %v518_v34 = vpop.f32.mrf.mxu1 }
 0x1f4   : > { %v539_v35 = vpack.c.bf16 %v521_v33, %v521_v33 }
 0x1f5   : > { %v815_v36 = vpop.f32.mrf.mxu1 }
 0x1f6   : > { %833 = vmatmul.mubr.bf16.vlgmr.msra.gmra.mxu0 %v539_v35 }
 0x2b6   : > { %v628_v38 = vpop.f32.mrf.mxu0 }
 0x2b7   : > { %v629_v39 = vadd.f32 %v756_v37, %v628_v38 }
 0x2b8   : > { %v834_v40 = vpop.f32.mrf.mxu0 }
 0x2b9   : > { %634 = vst [vmem:[%s337_s12] sm:$0xff] %v629_v39 }
 0x2ba   : > { %v631_v41 = vpop.f32.mrf.mxu0 }
 0x2bc   : > { %v835_v42 = vpop.f32.mrf.mxu0 }
 0x2bd PF: > { %p19_p4 = scmp.ge.s32.totalorder %s1196_s9, 4   ;;  %s1320_s24 = smov %s1068_s25 }
 0x2be   : > { %s1321_s25 = smov %s1072_s26  ;;  %s1322_s26 = smov %s1206_s10 }
 0x2bf   : > { %s1323_s27 = smov %s1196_s9  ;;  %21 = sbr.rel (!%p19_p4) target bundleno = 5 (0x5), region = 100 }
 0x2c4   :  { %654 = vsyncpa [#allocation3], 1 }
 0x2c5   :  { %656 = vsyncpa [#allocation3 + $0x1], 1 }
 0x2c6   :  { %657 = vsyncpa [#allocation5], 1 }
 0x2c7   :  { %658 = vsyncpa [#allocation8], 1 }

// kernel: mlp_forward.1
= control target key start
LH: loop header
LB: loop body
LE: loop exit
PB: predicated region body
PF: predicated region fallthrough
CT: control target
= control target key end

     0   :  { %12 = vsyncpa [#allocation3], 0  ;;  %s1299_s0 = inlined_call_operand.hbm [shape: f32[16,32], index: 0, kind: input, shape index: {}]   ;;  %s1300_s1 = inlined_call_operand.hbm [shape: bf16[32,128], index: 1, kind: input, shape index: {}]   ;;  %s1301_s2 = inlined_call_operand.vmem [shape: f32[1,128], index: 2, kind: input, shape index: {}]   ;;  %s1302_s3 = inlined_call_operand.hbm [shape: bf16[128,128], index: 3, kind: input, shape index: {}]   ;;  %s1303_s4 = inlined_call_operand.vmem [shape: f32[1,128], index: 4, kind: input, shape index: {}]   ;;  %s1304_s5 = inlined_call_operand.hbm [shape: bf16[128,128], index: 5, kind: input, shape index: {}]   ;;  %s1305_s6 = inlined_call_operand.vmem [shape: f32[1,128], index: 6, kind: input, shape index: {}]   ;;  %s1306_s7 = inlined_call_operand.vmem [shape: f32[16,128], index: 7, kind: output, shape index: {}]  }
   0x1   :  { %14 = vsyncpa [#allocation3 + $0x1], 0 }
   0x2   :  { %15 = vsyncpa [#allocation5], 0 }
   0x3   :  { %16 = vsyncpa [#allocation8], 0  ;;  %s1126_s24 = smov 0   ;;  %s1128_s25 = smov 0  }
   0x4   :  { %s1130_s26 = smov 0   ;;  %s1132_s27 = smov 0  }
   0x5 LB: > { %s1145_s28 = sadd.s32 4294967295, %s1076_s27   ;;  %p42_p0 = scmp.ne.s32.totalorder %s1068_s25, %s1064_s24  ;;  %s1076_s27 = sphi %s1132_s27, %s1323_s27   ;;  %s1072_s26 = sphi %s1130_s26, %s1322_s26   ;;  %s1068_s25 = sphi %s1128_s25, %s1321_s25   ;;  %s1064_s24 = sphi %s1126_s24, %s1320_s24  }
   0x6   : > { %p1307_p1 = scmp.eq.s32.totalorder %s1145_s28, 0  ;;  %p730_p2 = scmp.ge.s32.totalorder %s1076_s27, 1 }
   0x7   : > { %p205_p3 = scmp.lt.s32.totalorder %s1076_s27, 3  ;;  %s1078_s8 = smov [#allocation4]  }
   0x8   : > { %p1153_p4 = por %p1307_p1, %p42_p0  ;;  %s217_s9 = sshll.u32 %s1078_s8, 4  ;;  %s218_s9 = int_to_ptr.vmem [resolvable:$true] %s217_s9 }
   0x9   : > { %p1157_p5 = pnand %p730_p2, %p205_p3  ;;  %s1079_s11 = smov [#allocation6]  }
   0xa   : > { %s1310_s29 = scalar_select %p1153_p4, 1, 0 }
   0xb   : > { %s1311_s30 = scalar_select %p1157_p5, 1, 0 }
   0xc   : > { %p850_p6 = pneg %p1157_p5  ;;  %s233_s12 = sshll.u32 %s1079_s11, 4  ;;  %s234_s12 = int_to_ptr.vmem [resolvable:$true] %s233_s12 }
   0xd   : > { %s1080_s13 = smov [#allocation7]   ;;  %s939_s15 = scalar_lea.vmem %s218_s9, 256 }
   0xe   : > { %p1165_p7 = pnand %p850_p6, %p1307_p1  ;;  %s249_s14 = sshll.u32 %s1080_s13, 4  ;;  %s250_s14 = int_to_ptr.vmem [resolvable:$true] %s249_s14 }
   0xf   : > { %p940_p9 = scmp.ne.s32.totalorder %s218_s9, %s939_s15  ;;  %p947_p12 = scmp.lt.s32.totalorder %s218_s9, %s218_s9 }
  0x10   : > { %p930_p8 = pneg %p1165_p7  ;;  %p948_p13 = scmp.lt.s32.totalorder %s939_s15, %s939_s15 }
  0x12   : > { %p942_p10 = pnand %p940_p9, %p930_p8  ;;  %p949_p0 = por %p948_p13, %p947_p12 }
  0x14   : > { %p943_p11 = pneg %p942_p10 }
  0x16   : > { %p950_p2 = pnand %p949_p0, %p943_p11 }
  0x18   : > { %953 = shalt.err (!%p950_p2)
}
  0x19   : > { %s1081_s16 = smov 64   ;;  %s1082_s17 = smov 4  }
  0x1a   : > { %853 = dma.hbm_to_vmem [thread:$0]  (!%p1165_p7), %s1300_s1, 256, %s218_s9, [#allocation5], %s1081_s16, %s1081_s16, %s1082_s17  }
  0x1b   : > { %s965_s20 = scalar_lea.vmem %s234_s12, 1024  ;;  %p973_p10 = scmp.lt.s32.totalorder %s234_s12, %s234_s12 }
  0x1c   : > { %p966_p3 = scmp.ne.s32.totalorder %s234_s12, %s965_s20  ;;  %p974_p1 = scmp.lt.s32.totalorder %s965_s20, %s965_s20 }
  0x1e   : > { %p968_p6 = pnand %p966_p3, %p930_p8  ;;  %p975_p12 = por %p974_p1, %p973_p10 }
  0x20   : > { %p969_p9 = pneg %p968_p6 }
  0x22   : > { %p976_p11 = pnand %p975_p12, %p969_p9 }
  0x24   : > { %979 = shalt.err (!%p976_p11)
}
  0x25   : > { %856 = dma.hbm_to_vmem [thread:$0]  (!%p1165_p7), %s1302_s3, 1024, %s234_s12, [#allocation5], %s1081_s16, %s1081_s16, %s1082_s17  }
  0x26   : > { %s991_s23 = scalar_lea.vmem %s250_s14, 1024  ;;  %p999_p3 = scmp.lt.s32.totalorder %s250_s14, %s250_s14 }
  0x27   : > { %p992_p13 = scmp.ne.s32.totalorder %s250_s14, %s991_s23  ;;  %p1000_p6 = scmp.lt.s32.totalorder %s991_s23, %s991_s23 }
  0x29   : > { %p994_p0 = pnand %p992_p13, %p930_p8  ;;  %p1001_p4 = por %p1000_p6, %p999_p3 }
  0x2b   : > { %p995_p2 = pneg %p994_p0 }
  0x2d   : > { %p1002_p1 = pnand %p1001_p4, %p995_p2 }
  0x2f   : > { %1005 = shalt.err (!%p1002_p1)
}
  0x30   : > { %859 = dma.hbm_to_vmem [thread:$0]  (!%p1165_p7), %s1304_s5, 1024, %s250_s14, [#allocation8], %s1081_s16, %s1081_s16, %s1082_s17  }
  0x31   : > { %s1196_s9 = sadd.s32 1, %s1076_s27   ;;  %s29_s12 = sadd.s32 1, %s1072_s26 }
  0x32   : > { %s26_s11 = ssub.s32 %s1076_s27, %s1196_s9  ;;  %p36_p8 = scmp.ne.s32.totalorder %s1072_s26, %s1068_s25 }
  0x33   : > { %p27_p4 = scmp.eq.s32.totalorder %s26_s11, 0  ;;  %p37_p9 = scmp.eq.s32.totalorder %s1076_s27, 0 }
  0x34   : > { %p867_p10 = scmp.lt.s32.totalorder %s1076_s27, 2  ;;  %s266_s13 = sand.u32 1, %s1072_s26  }
  0x35   : > { %s1206_s10 = scalar_select %p27_p4, %s1072_s26, %s29_s12  }
  0x36   : > { %p38_p12 = por %p37_p9, %p36_p8  ;;  %s735_s15 = sshll.u32 %s266_s13, 3 }
  0x37   : > { %s736_s18 = sshll.u32 %s1076_s27, 7  ;;  %s270_s14 = scalar_lea.vmem [#allocation2], %s735_s15 }
  0x38   : > { %s1213_s21 = scalar_lea.hbm %s1299_s0, %s736_s18  ;;  %s277_s16 = sshll.u32 %s270_s14, 4  ;;  %s278_s16 = int_to_ptr.vmem [resolvable:$true] %s277_s16 }
  0x39   : > { %p1215_p7 = pnand %p867_p10, %p38_p12  ;;  %s267_s22 = scalar_lea.sflag [#allocation3], %s266_s13 }
  0x3a   : > { %s1006_s23 = scalar_lea.hbm %s1213_s21, 128  ;;  %s1011_s8 = scalar_lea.hbm %s1299_s0, 256 }
  0x3b   : > { %p1007_p11 = scmp.ne.s32.totalorder %s1213_s21, %s1006_s23  ;;  %p1008_p13 = pneg %p1215_p7 }
  0x3c   : > { %p1012_p3 = scmp.lt.s32.totalorder %s1213_s21, %s1299_s0  ;;  %p1013_p6 = scmp.lt.s32.totalorder %s1011_s8, %s1006_s23 }
  0x3d   : > { %p1009_p0 = pnand %p1008_p13, %p1007_p11 }
  0x3e   : > { %p1014_p1 = por %p1013_p6, %p1012_p3 }
  0x3f   : > { %p1010_p2 = pneg %p1009_p0 }
  0x41   : > { %p1015_p4 = pnand %p1014_p1, %p1010_p2 }
  0x43   : > { %1018 = shalt.err (!%p1015_p4)
}
  0x44   : > { %s1019_s15 = scalar_lea.vmem %s278_s16, 128  ;;  %s1083_s13 = smov [#allocation2]  }
  0x45   : > { %p1020_p8 = scmp.ne.s32.totalorder %s278_s16, %s1019_s15  ;;  %s1024_s18 = sshll.u32 %s1083_s13, 4  ;;  %s1025_s18 = int_to_ptr.vmem [resolvable:$false] %s1024_s18 }
  0x46   : > { %s1026_s19 = scalar_lea.vmem %s1025_s18, 256  ;;  %p1027_p12 = scmp.lt.s32.totalorder %s278_s16, %s1025_s18 }
  0x47   : > { %p1022_p9 = pnand %p1020_p8, %p1008_p13  ;;  %p1028_p11 = scmp.lt.s32.totalorder %s1026_s19, %s1019_s15 }
  0x49   : > { %p1023_p10 = pneg %p1022_p9  ;;  %p1029_p0 = por %p1028_p11, %p1027_p12 }
  0x4b   : > { %p1030_p5 = pnand %p1029_p0, %p1023_p10 }
  0x4d   : > { %1033 = shalt.err (!%p1030_p5)
}
  0x4e   : > { %863 = dma.hbm_to_vmem [thread:$0]  (!%p1215_p7), %s1213_s21, 128, %s278_s16, %s267_s22  }
  0x4f   : > { %p1314_p2 = scmp.ne.s32.totalorder %s1311_s30, 0 }
  0x50   : > { %s288_s20 = sand.u32 (!%p1314_p2), 1, %s1068_s25   ;;  %p1315_p13 = scmp.ne.s32.totalorder (!%p1314_p2), %s1310_s29, 0 }
  0x51   : > { %286 = sbr.rel (%p1314_p2) target bundleno = 701 (0x2bd), region = 48  ;;  %s738_s14 = sshll.u32 (!%p1314_p2), %s288_s20, 3 }
  0x52   : > { %s289_s23 = scalar_lea.sflag (!%p1314_p2), [#allocation3], %s288_s20  ;;  %s292_s27 = scalar_lea.vmem (!%p1314_p2), [#allocation2], %s738_s14 }
  0x56   : > { %1051 = dma.done.wait (%p1315_p13), %s289_s23, 128  }
  0x57   : > { %1053 = vsyncadd (%p1315_p13), %s289_s23, 4294967168  ;;  %p1316_p5 = scmp.eq.s32.totalorder %s1145_s28, 0 }
  0x59   : > { %1055 = dma.done.wait (%p1316_p5), [#allocation5], 1280   ;;  %p1317_p3 = pmov %p1316_p5 }
  0x5b   : > { %1057 = vsyncadd (%p1317_p3), [#allocation5], 4294966016  ;;  %p1318_p7 = pmov %p1317_p3 }
  0x5c   : > { %p1319_p6 = pmov %p1317_p3 }
  0x5d   : > { %1059 = dma.done.wait (%p1318_p7), [#allocation8], 1024  }
  0x5e   : > { %1061 = vsyncadd (%p1319_p6), [#allocation8], 4294966272  ;;  %v1084_v0 = vmov 0.0   ;;  %vm1085_vm0 = vmmov 0   ;;  %v910_v1 = vld [vmem:[#allocation4 + $0x8] sm:$0xff]   ;;  %v911_v2 = vld [vmem:[#allocation4] sm:$0xff]  }
  0x5f   : > { %788 = vmatprep.subr.bf16.mxu0 %v1084_v0  ;;  %792 = vmatprep.mubr.msk.bf16.mxu0 %vm1085_vm0, %v1084_v0  ;;  %v339_v3 = vld [vmem:[%s292_s27] sm:$0xff]  ;;  %v912_v4 = vld [vmem:[#allocation6 + $0x38] sm:$0xff]   ;;  %v913_v6 = vld [vmem:[#allocation6 + $0x30] sm:$0xff]   ;;  %vm364_vm1 = vcmask 261120   ;;  %p334_p1 = scmp.lt.s32.totalorder %s1145_s28, 1 }
  0x60   : > { %796 = vmatprep.subr.bf16.mxu1 %v1084_v0  ;;  %812 = vmatprep.mubr.msk.bf16.mxu1 %vm1085_vm0, %v1084_v0  ;;  %v345_v5 = vpack.c.bf16 %v339_v3, %v339_v3  ;;  %v914_v7 = vld [vmem:[#allocation6 + $0x28] sm:$0xff]   ;;  %v915_v8 = vld [vmem:[#allocation6 + $0x20] sm:$0xff]   ;;  %v916_v9 = vld [vmem:[#allocation6 + $0x18] sm:$0xff]  }
  0x61   : > { %789 = vmatpush3.bf16.msra.mxu0 %v910_v1  ;;  %797 = vmatpush3.bf16.msra.mxu1 %v912_v4  ;;  %v917_v10 = vld [vmem:[#allocation6 + $0x10] sm:$0xff]   ;;  %v918_v11 = vld [vmem:[#allocation6 + $0x8] sm:$0xff]   ;;  %v919_v12 = vld [vmem:[#allocation6] sm:$0xff]   ;;  %s1325_s28 = smov (!%p334_p1, %s1145_s28), 1 }
  0x62   : > { %790 = vmatprep.subr.bf16.mxu0 %v1084_v0  ;;  %798 = vmatprep.subr.bf16.mxu1 %v1084_v0  ;;  %v920_v13 = vld [vmem:[#allocation7 + $0x38] sm:$0xff]   ;;  %v921_v14 = vld [vmem:[#allocation7 + $0x30] sm:$0xff]   ;;  %v922_v15 = vld [vmem:[#allocation7 + $0x28] sm:$0xff]   ;;  %s742_s17 = sshll.u32 %s1325_s28, 3 }
  0x63   : > { %v923_v16 = vld [vmem:[#allocation7 + $0x20] sm:$0xff]   ;;  %v924_v17 = vld [vmem:[#allocation7 + $0x18] sm:$0xff]   ;;  %v925_v18 = vld [vmem:[#allocation7 + $0x10] sm:$0xff]   ;;  %s337_s12 = scalar_lea.vmem %s1306_s7, %s742_s17 }
  0x64   : > { %v743_v19 = vld [vmem:[%s1301_s2] ss:$0 sm:$0xff]  ;;  %v926_v27 = vld [vmem:[#allocation7 + $0x8] sm:$0xff]  }
  0x65   : > { %791 = vmatpush3.bf16.msra.mxu0 %v911_v2  ;;  %799 = vmatpush3.bf16.msra.mxu1 %v913_v6  ;;  %v927_v28 = vld [vmem:[#allocation7] sm:$0xff]  }
  0x66   : > { %816 = vmatprep.subr.bf16.mxu0 %v1084_v0  ;;  %800 = vmatprep.subr.bf16.mxu1 %v1084_v0  ;;  %v747_v29 = vld [vmem:[%s1303_s4] ss:$0 sm:$0xff] }
  0x67   : > { %v756_v37 = vld [vmem:[%s1305_s6] ss:$0 sm:$0xff] }
  0x68   : > { %793 = vmatmul.mubr.msk.bf16.vlgmr.msra.gmra.mxu0 %vm364_vm1, %v345_v5 }
  0x69   : > { %832 = vmatprep.mubr.msk.bf16.mxu0 %vm1085_vm0, %v1084_v0  ;;  %801 = vmatpush3.bf16.msra.mxu1 %v914_v7 }
  0x6a   : > { %802 = vmatprep.subr.bf16.mxu1 %v1084_v0  ;;  %817 = vmatpush3.bf16.msra.mxu0 %v920_v13 }
  0x6b   : > { %818 = vmatprep.subr.bf16.mxu0 %v1084_v0 }
  0x6d   : > { %803 = vmatpush3.bf16.msra.mxu1 %v915_v8 }
  0x6e   : > { %804 = vmatprep.subr.bf16.mxu1 %v1084_v0  ;;  %819 = vmatpush3.bf16.msra.mxu0 %v921_v14 }
  0x6f   : > { %820 = vmatprep.subr.bf16.mxu0 %v1084_v0 }
  0x71   : > { %805 = vmatpush3.bf16.msra.mxu1 %v916_v9 }
  0x72   : > { %806 = vmatprep.subr.bf16.mxu1 %v1084_v0  ;;  %821 = vmatpush3.bf16.msra.mxu0 %v922_v15 }
  0x73   : > { %822 = vmatprep.subr.bf16.mxu0 %v1084_v0 }
  0x75   : > { %807 = vmatpush3.bf16.msra.mxu1 %v917_v10 }
  0x76   : > { %808 = vmatprep.subr.bf16.mxu1 %v1084_v0  ;;  %823 = vmatpush3.bf16.msra.mxu0 %v923_v16 }
  0x77   : > { %824 = vmatprep.subr.bf16.mxu0 %v1084_v0 }
  0x79   : > { %809 = vmatpush3.bf16.msra.mxu1 %v918_v11 }
  0x7a   : > { %810 = vmatprep.subr.bf16.mxu1 %v1084_v0  ;;  %825 = vmatpush3.bf16.msra.mxu0 %v924_v17 }
  0x7b   : > { %826 = vmatprep.subr.bf16.mxu0 %v1084_v0 }
  0x7d   : > { %811 = vmatpush3.bf16.msra.mxu1 %v919_v12 }
  0x7e   : > { %827 = vmatpush3.bf16.msra.mxu0 %v925_v18 }
  0x7f   : > { %828 = vmatprep.subr.bf16.mxu0 %v1084_v0 }
  0x82   : > { %829 = vmatpush3.bf16.msra.mxu0 %v926_v27 }
  0x83   : > { %830 = vmatprep.subr.bf16.mxu0 %v1084_v0 }
  0x86   : > { %831 = vmatpush3.bf16.msra.mxu0 %v927_v28 }
 0x128   : > { %v402_v20 = vpop.f32.mrf.mxu0 }
 0x129   : > { %v403_v21 = vadd.f32 %v743_v19, %v402_v20 }
 0x12a   : > { %v794_v22 = vpop.f32.mrf.mxu0 }
 0x12b   : > { %v408_v23 = vmax.f32 %v403_v21, 0.0 }
 0x12c   : > { %v405_v24 = vpop.f32.mrf.mxu0 }
 0x12d   : > { %v426_v25 = vpack.c.bf16 %v408_v23, %v408_v23 }
 0x12e   : > { %v795_v26 = vpop.f32.mrf.mxu0 }
 0x12f   : > { %813 = vmatmul.mubr.bf16.vlgmr.msra.gmra.mxu1 %v426_v25 }
 0x1ef   : > { %v515_v30 = vpop.f32.mrf.mxu1 }
 0x1f0   : > { %v516_v31 = vadd.f32 %v747_v29, %v515_v30 }
 0x1f1   : > { %v814_v32 = vpop.f32.mrf.mxu1 }
 0x1f2   : > { %v521_v33 = vmax.f32 %v516_v31, 0.0 }
 0x1f3   : > { %v518_v34 = vpop.f32.mrf.mxu1 }
 0x1f4   : > { %v539_v35 = vpack.c.bf16 %v521_v33, %v521_v33 }
 0x1f5   : > { %v815_v36 = vpop.f32.mrf.mxu1 }
 0x1f6   : > { %833 = vmatmul.mubr.bf16.vlgmr.msra.gmra.mxu0 %v539_v35 }
 0x2b6   : > { %v628_v38 = vpop.f32.mrf.mxu0 }
 0x2b7   : > { %v629_v39 = vadd.f32 %v756_v37, %v628_v38 }
 0x2b8   : > { %v834_v40 = vpop.f32.mrf.mxu0 }
 0x2b9   : > { %634 = vst [vmem:[%s337_s12] sm:$0xff] %v629_v39 }
 0x2ba   : > { %v631_v41 = vpop.f32.mrf.mxu0 }
 0x2bc   : > { %v835_v42 = vpop.f32.mrf.mxu0 }
 0x2bd PF: > { %p19_p4 = scmp.ge.s32.totalorder %s1196_s9, 4   ;;  %s1320_s24 = smov %s1068_s25 }
 0x2be   : > { %s1321_s25 = smov %s1072_s26  ;;  %s1322_s26 = smov %s1206_s10 }
 0x2bf   : > { %s1323_s27 = smov %s1196_s9  ;;  %21 = sbr.rel (!%p19_p4) target bundleno = 5 (0x5), region = 100 }
 0x2c4   :  { %654 = vsyncpa [#allocation3], 1 }
 0x2c5   :  { %656 = vsyncpa [#allocation3 + $0x1], 1 }
 0x2c6   :  { %657 = vsyncpa [#allocation5], 1 }
 0x2c7   :  { %658 = vsyncpa [#allocation8], 1 }

</bundles_post_ra>
